<compile_context>
chip_gen: v5e
topology: v5e:2x2
jax: 0.10.0
libtpu: 0.0.40
codegen_flags: <defaults>
</compile_context>

<pallas_src>
import jax
import jax.numpy as jnp
from jax.experimental import pallas as pl
from jax.experimental.pallas import tpu as pltpu


def _round_up(a, b):
    return (a + b - 1) // b * b


def _tpu_info():
    """Returns (use_bf16_distances_by_default, vmem_capacity_bytes, has_two_tensorcores)."""
    kind = ""
    try:
        kind = jax.devices()[0].device_kind.lower()
    except Exception:
        pass
    vmem = None
    try:
        vmem = int(pltpu.get_tpu_info().vmem_capacity_bytes)
    except Exception:
        vmem = None
    is_v7 = "v7" in kind
    if vmem is None or vmem <= 0:
        vmem = (64 << 20) if is_v7 else (128 << 20)
    bf16_default = ("v6" in kind) or is_v7   # bf16 MXU/VPU path per review (v6e/v7x only)
    return bf16_default, vmem, is_v7


def _make_vq_kernel(K, D, k_chunk, precise):
    """Kernel for one lane-dense pixel tile of one (codebook, batch) pair.

    x_ref:     (1, 1, D, TP) float   -- D features (sublanes) x TP pixels (lanes)
    cb_ref:    (1, K, D)     float32 -- codebook
    cbt_ref:   (1, D, K)     float32 -- codebook transposed (for the one-hot gather)
    esq_ref:   (1, K, 1)     float32 -- precomputed ||e_k||^2
    codes_ref: (1, 1, D, TP) float32 -- nearest codebook vectors
    idx_ref:   (1, 1, 1, TP) int32   -- argmin indices (lane-dense)
    """
    n_chunks = K // k_chunk

    def kernel(x_ref, cb_ref, cbt_ref, esq_ref, codes_ref, idx_ref):
        f32, bf16 = jnp.float32, jnp.bfloat16
        x = x_ref[0, 0]                                   # (D, TP)
        TP = x.shape[1]

        x_h = x.astype(bf16)                              # bf16 "hi" part of x
        if precise:
            x_l = (x.astype(f32) - x_h.astype(f32)).astype(bf16)

        best_d = jnp.full((1, TP), jnp.inf, dtype=f32)
        best_i = jnp.zeros((1, TP), dtype=jnp.int32)

        # ---- distances + running argmin, K consumed in chunks (MXU matmuls) ----
        for c in range(n_chunks):
            lo, hi = c * k_chunk, (c + 1) * k_chunk
            cbc = cb_ref[0, lo:hi, :]                     # (kc, D) f32
            esq = esq_ref[0, lo:hi, :]                    # (kc, 1) f32
            cb_h = cbc.astype(bf16)
            dot = jnp.dot(cb_h, x_h, preferred_element_type=f32)      # (kc, TP)
            if precise:
                cb_l = (cbc - cb_h.astype(f32)).astype(bf16)
                dot = dot + jnp.dot(cb_h, x_l, preferred_element_type=f32)
                dot = dot + jnp.dot(cb_l, x_h, preferred_element_type=f32)
            d = esq - 2.0 * dot                                         # (kc, TP) f32

            # First-occurrence argmin within the chunk: min-reduce + iota-min (XLU).
            md = jnp.min(d, axis=0, keepdims=True)                      # (1, TP)
            kio = (jax.lax.broadcasted_iota(jnp.int32, d.shape, 0) + lo).astype(f32)
            mi = jnp.min(jnp.where(d == md, kio, jnp.float32(K)),
                         axis=0, keepdims=True).astype(jnp.int32)       # (1, TP)
            # Combine with running best; strict '<' keeps earlier chunks on ties.
            take = md < best_d
            best_i = jnp.where(take, mi, best_i)
            best_d = jnp.where(take, md, best_d)

        # ---- codeword gather: one-hot MXU matmuls (hi/lo split keeps codes ~exact) ----
        codes = jnp.zeros((D, TP), dtype=f32)
        for c in range(n_chunks):
            lo, hi = c * k_chunk, (c + 1) * k_chunk
            cbtc = cbt_ref[0, :, lo:hi]                                 # (D, kc) f32
            kio = jax.lax.broadcasted_iota(jnp.int32, (k_chunk, TP), 0) + lo
            onehot = (kio == best_i).astype(bf16)                       # (kc, TP)
            cbt_h = cbtc.astype(bf16)
            cbt_l = (cbtc - cbt_h.astype(f32)).astype(bf16)
            codes = codes + jnp.dot(cbt_h, onehot, preferred_element_type=f32)
            codes = codes + jnp.dot(cbt_l, onehot, preferred_element_type=f32)

        codes_ref[...] = codes.astype(codes_ref.dtype)[None, None]
        idx_ref[...] = best_i[None, None]

    return kernel


def multi_vq_forward(x, codebooks, num_codebooks, *, distance_dtype=None,
                     max_tile_pixels=32768):
    """MultiVQ.forward (eval) for float NCHW input.

    x:         (N, C, H, W) float32 (bf16 also accepted)
    codebooks: (num_codebooks, num_tokens, C // num_codebooks) float32
    returns:   codes (N, C, H, W) float32, indices (N, num_codebooks*H, W) int32
    """
    N, C, H, W = x.shape
    nc = num_codebooks
    assert C % nc == 0, "num_codebooks must divide latent_dim"
    D = C // nc
    K = codebooks.shape[1]
    P = H * W

    bf16_default, vmem_cap, is_v7 = _tpu_info()
    if distance_dtype is None:
        distance_dtype = jnp.bfloat16 if bf16_default else jnp.float32
    precise = jnp.dtype(distance_dtype) != jnp.dtype(jnp.bfloat16)

    # Free reshape: channels chunked per codebook, pixels flattened onto lanes.
    x4 = x.reshape(N, nc, D, P)
    p128 = _round_up(P, 128)
    if p128 != P:
        # TODO(synk): handle the ragged pixel tail with in-kernel masked stores instead of
        # this extra HBM pass (only hit when H*W is not a multiple of 128).
        x4 = jnp.pad(x4, ((0, 0), (0, 0), (0, 0), (0, p128 - P)))

    # K chunking: <=256 rows at a time (multiple of 128 when possible, per the v5e MXU note).
    if K <= 256:
        k_chunk = K
    elif K % 256 == 0:
        k_chunk = 256
    elif K % 128 == 0:
        k_chunk = 128
    else:
        k_chunk = K  # TODO(synk): pad K to a multiple of 128 for very large odd K.

    # Lane-dense pixel tile sized from a generation-aware VMEM budget.
    # Per-pixel bytes: double-buffered x/codes/idx blocks + in-kernel intermediates
    # (bf16 x split, (k_chunk, TP) dists + one-hot, f32 codes accumulator, argmin state).
    per_pixel = 24 * D + 6 * k_chunk + 48
    const = 24 * K * D + 16 * K + (1 << 20)
    budget = max(vmem_cap // 2 - const, 128 * per_pixel)
    tile = budget // per_pixel
    tile = max(128, min(int(tile), int(max_tile_pixels), p128))
    tile = (tile // 128) * 128
    while p128 % tile != 0:          # no ragged pixel blocks
        tile -= 128
    # v7x has 2 TensorCores per chip: keep at least 2 grid steps.
    if is_v7 and nc * N * (p128 // tile) < 2 and p128 >= 256:
        tile = _round_up(p128 // 2, 128)
        while p128 % tile != 0:
            tile -= 128

    cb = codebooks.astype(jnp.float32)                      # (nc, K, D)
    cbt = jnp.transpose(cb, (0, 2, 1))                      # (nc, D, K)  (tiny)
    e_sq = jnp.sum(cb * cb, axis=-1, keepdims=True)         # (nc, K, 1)  precomputed once

    # Pixel axis innermost -> codebook blocks stay resident between consecutive steps.
    grid = (nc, N, p128 // tile)
    kernel = _make_vq_kernel(K, D, k_chunk, precise)

    codes4, idx4 = pl.pallas_call(
        kernel,
        out_shape=(
            jax.ShapeDtypeStruct((N, nc, D, p128), codebooks.dtype),
            jax.ShapeDtypeStruct((N, nc, 1, p128), jnp.int32),
        ),
        grid_spec=pltpu.PrefetchScalarGridSpec(
            num_scalar_prefetch=0,
            grid=grid,
            in_specs=[
                pl.BlockSpec((1, 1, D, tile), lambda c, n, p: (n, c, 0, p)),
                pl.BlockSpec((1, K, D), lambda c, n, p: (c, 0, 0)),
                pl.BlockSpec((1, D, K), lambda c, n, p: (c, 0, 0)),
                pl.BlockSpec((1, K, 1), lambda c, n, p: (c, 0, 0)),
            ],
            out_specs=[
                pl.BlockSpec((1, 1, D, tile), lambda c, n, p: (n, c, 0, p)),
                pl.BlockSpec((1, 1, 1, tile), lambda c, n, p: (n, c, 0, p)),
            ],
        ),
        compiler_params=pltpu.CompilerParams(
            dimension_semantics=("parallel", "parallel", "parallel"),
            vmem_limit_bytes=int(vmem_cap * 3 // 4),
        ),
    )(x4, cb, cbt, e_sq)

    # Free reshapes back to the PyTorch output formats (slice only if padded).
    codes = codes4[:, :, :, :P].reshape(N, C, H, W)
    idx = idx4[:, :, 0, :P].reshape(N, nc, H, W).reshape(N, nc * H, W)
    return codes, idx


if __name__ == "__main__":
    # Module hyperparameters (small, consistent with MultiVQ)
    latent_dim = 8        # channels C
    num_tokens = 16       # codebook size K
    num_codebooks = 2     # nc  -> per-codebook feature dim D = 4
    N, H, W = 2, 16, 16

    key = jax.random.PRNGKey(0)
    kx, kcb = jax.random.split(key)

    x = jax.random.normal(kx, (N, latent_dim, H, W), dtype=jnp.float32)
    # nn.Embedding weights per VQ: init ~ Normal(0, 1.1), stacked per codebook
    codebooks = 1.1 * jax.random.normal(
        kcb, (num_codebooks, num_tokens, latent_dim // num_codebooks),
        dtype=jnp.float32)

    nc, D, P = num_codebooks, latent_dim // num_codebooks, H * W

    # Exact f32 reference distances / argmin (pure JAX).
    x4r = x.reshape(N, nc, D, P)                                     # (N,nc,D,P)
    diff = x4r[:, :, None, :, :] - codebooks[None, :, :, :, None]    # (N,nc,K,D,P)
    dist = jnp.sum(diff * diff, axis=3)                              # (N,nc,K,P)
    ref_idx = jnp.argmin(dist, axis=2)                               # (N,nc,P)
    min_d = jnp.min(dist, axis=2)                                    # (N,nc,P)

    def check(codes, indices, *, min_match, dist_tol):
        assert codes.shape == (N, latent_dim, H, W)
        assert indices.shape == (N, num_codebooks * H, W)
        idx3 = indices.reshape(N, nc, P)
        # 1) codes are the gathered codebook entries of the kernel's own indices
        gathered = codebooks[jnp.arange(nc)[None, :, None], idx3, :]  # (N,nc,P,D)
        codes_k = codes.reshape(N, nc, D, P)
        assert bool(jnp.allclose(codes_k, jnp.transpose(gathered, (0, 1, 3, 2)),
                                 rtol=1e-4, atol=1e-5))
        # 2) chosen codes are (near-)optimal under the exact L2 distance
        got_d = jnp.take_along_axis(dist, idx3[:, :, None, :], axis=2)[:, :, 0, :]
        assert bool(jnp.all(got_d <= min_d + dist_tol))
        # 3) index agreement with the exact argmin (near-ties may flip at reduced precision)
        match = float(jnp.mean((idx3 == ref_idx).astype(jnp.float32)))
        assert match >= min_match, match

    # Precise (bf16x3 on the MXU) distance path: near-f32 accurate.
    codes, indices = multi_vq_forward(x, codebooks, num_codebooks,
                                      distance_dtype=jnp.float32)
    codes = jax.block_until_ready(codes)
    indices = jax.block_until_ready(indices)
    check(codes, indices, min_match=0.99, dist_tol=5e-3)

    # Fast single-pass bf16 distance path (review: preferred on v6e/v7x).  Same gather
    # accuracy; argmin may flip only on near-ties.
    codes_b, indices_b = multi_vq_forward(x, codebooks, num_codebooks,
                                          distance_dtype=jnp.bfloat16)
    codes_b = jax.block_until_ready(codes_b)
    indices_b = jax.block_until_ready(indices_b)
    check(codes_b, indices_b, min_match=0.90, dist_tol=1.0)

    print("KERNEL_OK")
</pallas_src>

<mosaic_0001>
module attributes {stable_mosaic.version = 11 : i64} {
  func.func @kernel(%arg0: i32, %arg1: i32, %arg2: i32, %arg3: memref<1x1x4x256xf32, #tpu.memory_space<vmem>>, %arg4: memref<1x16x4xf32, #tpu.memory_space<vmem>>, %arg5: memref<1x4x16xf32, #tpu.memory_space<vmem>>, %arg6: memref<1x16x1xf32, #tpu.memory_space<vmem>>, %arg7: memref<1x1x4x256xf32, #tpu.memory_space<vmem>>, %arg8: memref<1x1x1x256xi32, #tpu.memory_space<vmem>>) attributes {dimension_semantics = [#tpu.dimension_semantics<parallel>, #tpu.dimension_semantics<parallel>, #tpu.dimension_semantics<parallel>], iteration_bounds = array<i64: 2, 2, 1>, scalar_prefetch = 0 : i64, scratch_operands = 0 : i64, tpu.core_type = #tpu.core_type<tc>, window_params = [{transform_indices = @transform_0, window_bounds = array<i64: 1, 1, 4, 256>}, {transform_indices = @transform_1, window_bounds = array<i64: 1, 16, 4>}, {transform_indices = @transform_2, window_bounds = array<i64: 1, 4, 16>}, {transform_indices = @transform_3, window_bounds = array<i64: 1, 16, 1>}, {transform_indices = @transform_4, window_bounds = array<i64: 1, 1, 4, 256>}, {transform_indices = @transform_5, window_bounds = array<i64: 1, 1, 1, 256>}]} {
    %c0 = arith.constant 0 : index
    %c0_0 = arith.constant 0 : index
    %c0_1 = arith.constant 0 : index
    %c0_2 = arith.constant 0 : index
    %0 = vector.load %arg3[%c0, %c0_0, %c0_1, %c0_2] : memref<1x1x4x256xf32, #tpu.memory_space<vmem>>, vector<1x1x4x256xf32>
    %1 = vector.shape_cast %0 : vector<1x1x4x256xf32> to vector<4x256xf32>
    %2 = arith.truncf %1 : vector<4x256xf32> to vector<4x256xbf16>
    %3 = arith.extf %2 : vector<4x256xbf16> to vector<4x256xf32>
    %4 = arith.subf %1, %3 : vector<4x256xf32>
    %5 = arith.truncf %4 : vector<4x256xf32> to vector<4x256xbf16>
    %cst = arith.constant 0x7F800000 : f32
    %6 = vector.broadcast %cst : f32 to vector<1x256xf32>
    %c0_i32 = arith.constant 0 : i32
    %7 = vector.broadcast %c0_i32 : i32 to vector<1x256xi32>
    %c0_3 = arith.constant 0 : index
    %c0_4 = arith.constant 0 : index
    %c0_5 = arith.constant 0 : index
    %8 = vector.load %arg4[%c0_3, %c0_4, %c0_5] : memref<1x16x4xf32, #tpu.memory_space<vmem>>, vector<1x16x4xf32>
    %9 = vector.shape_cast %8 : vector<1x16x4xf32> to vector<16x4xf32>
    %c0_6 = arith.constant 0 : index
    %c0_7 = arith.constant 0 : index
    %c0_8 = arith.constant 0 : index
    %10 = vector.load %arg6[%c0_6, %c0_7, %c0_8] : memref<1x16x1xf32, #tpu.memory_space<vmem>>, vector<1x16x1xf32>
    %11 = vector.shape_cast %10 : vector<1x16x1xf32> to vector<16x1xf32>
    %12 = arith.truncf %9 : vector<16x4xf32> to vector<16x4xbf16>
    %cst_9 = arith.constant dense<0.000000e+00> : vector<16x256xf32>
    %13 = tpu.matmul %12, %2, %cst_9 {dimension_numbers = #tpu.dot_dimension_numbers<[1], [0], [0], [1], [0, 0, 1, 1], [], []>} : vector<16x4xbf16>, vector<4x256xbf16>, vector<16x256xf32> -> vector<16x256xf32>
    %14 = arith.extf %12 : vector<16x4xbf16> to vector<16x4xf32>
    %15 = arith.subf %9, %14 : vector<16x4xf32>
    %16 = arith.truncf %15 : vector<16x4xf32> to vector<16x4xbf16>
    %cst_10 = arith.constant dense<0.000000e+00> : vector<16x256xf32>
    %17 = tpu.matmul %12, %5, %cst_10 {dimension_numbers = #tpu.dot_dimension_numbers<[1], [0], [0], [1], [0, 0, 1, 1], [], []>} : vector<16x4xbf16>, vector<4x256xbf16>, vector<16x256xf32> -> vector<16x256xf32>
    %18 = arith.addf %13, %17 : vector<16x256xf32>
    %cst_11 = arith.constant dense<0.000000e+00> : vector<16x256xf32>
    %19 = tpu.matmul %16, %2, %cst_11 {dimension_numbers = #tpu.dot_dimension_numbers<[1], [0], [0], [1], [0, 0, 1, 1], [], []>} : vector<16x4xbf16>, vector<4x256xbf16>, vector<16x256xf32> -> vector<16x256xf32>
    %20 = arith.addf %18, %19 : vector<16x256xf32>
    %cst_12 = arith.constant 2.000000e+00 : f32
    %21 = vector.broadcast %cst_12 : f32 to vector<16x256xf32>
    %22 = arith.mulf %21, %20 : vector<16x256xf32>
    %23 = vector.broadcast %11 : vector<16x1xf32> to vector<16x256xf32>
    %24 = arith.subf %23, %22 : vector<16x256xf32>
    %cst_13 = arith.constant dense<0x7F800000> : vector<256xf32>
    %25 = vector.multi_reduction <minimumf>, %24, %cst_13 [0] : vector<16x256xf32> to vector<256xf32>
    %26 = vector.shape_cast %25 : vector<256xf32> to vector<1x256xf32>
    %27 = tpu.iota {dimensions = array<i32: 0>} : vector<16x256xi32>
    %c0_i32_14 = arith.constant 0 : i32
    %28 = vector.broadcast %c0_i32_14 : i32 to vector<16x256xi32>
    %29 = arith.addi %27, %28 : vector<16x256xi32>
    %30 = arith.sitofp %29 : vector<16x256xi32> to vector<16x256xf32>
    %31 = vector.broadcast %26 : vector<1x256xf32> to vector<16x256xf32>
    %32 = arith.cmpf oeq, %24, %31 : vector<16x256xf32>
    %cst_15 = arith.constant 1.600000e+01 : f32
    %33 = vector.broadcast %cst_15 : f32 to vector<16x256xf32>
    %34 = arith.select %32, %30, %33 : vector<16x256xi1>, vector<16x256xf32>
    %cst_16 = arith.constant dense<0x7F800000> : vector<256xf32>
    %35 = vector.multi_reduction <minimumf>, %34, %cst_16 [0] : vector<16x256xf32> to vector<256xf32>
    %36 = vector.shape_cast %35 : vector<256xf32> to vector<1x256xf32>
    %37 = arith.fptosi %36 : vector<1x256xf32> to vector<1x256xi32>
    %38 = arith.cmpf olt, %26, %6 : vector<1x256xf32>
    %39 = arith.select %38, %37, %7 : vector<1x256xi1>, vector<1x256xi32>
    %cst_17 = arith.constant 0.000000e+00 : f32
    %40 = vector.broadcast %cst_17 : f32 to vector<4x256xf32>
    %c0_18 = arith.constant 0 : index
    %c0_19 = arith.constant 0 : index
    %c0_20 = arith.constant 0 : index
    %41 = vector.load %arg5[%c0_18, %c0_19, %c0_20] : memref<1x4x16xf32, #tpu.memory_space<vmem>>, vector<1x4x16xf32>
    %42 = vector.shape_cast %41 : vector<1x4x16xf32> to vector<4x16xf32>
    %43 = tpu.iota {dimensions = array<i32: 0>} : vector<16x256xi32>
    %c0_i32_21 = arith.constant 0 : i32
    %44 = vector.broadcast %c0_i32_21 : i32 to vector<16x256xi32>
    %45 = arith.addi %43, %44 : vector<16x256xi32>
    %46 = vector.broadcast %39 : vector<1x256xi32> to vector<16x256xi32>
    %47 = arith.cmpi eq, %45, %46 : vector<16x256xi32>
    %48 = arith.extui %47 : vector<16x256xi1> to vector<16x256xi32>
    %49 = arith.sitofp %48 : vector<16x256xi32> to vector<16x256xf32>
    %50 = arith.truncf %49 : vector<16x256xf32> to vector<16x256xbf16>
    %51 = arith.truncf %42 : vector<4x16xf32> to vector<4x16xbf16>
    %52 = arith.extf %51 : vector<4x16xbf16> to vector<4x16xf32>
    %53 = arith.subf %42, %52 : vector<4x16xf32>
    %54 = arith.truncf %53 : vector<4x16xf32> to vector<4x16xbf16>
    %cst_22 = arith.constant dense<0.000000e+00> : vector<4x256xf32>
    %55 = tpu.matmul %51, %50, %cst_22 {dimension_numbers = #tpu.dot_dimension_numbers<[1], [0], [0], [1], [0, 0, 1, 1], [], []>} : vector<4x16xbf16>, vector<16x256xbf16>, vector<4x256xf32> -> vector<4x256xf32>
    %56 = arith.addf %40, %55 : vector<4x256xf32>
    %cst_23 = arith.constant dense<0.000000e+00> : vector<4x256xf32>
    %57 = tpu.matmul %54, %50, %cst_23 {dimension_numbers = #tpu.dot_dimension_numbers<[1], [0], [0], [1], [0, 0, 1, 1], [], []>} : vector<4x16xbf16>, vector<16x256xbf16>, vector<4x256xf32> -> vector<4x256xf32>
    %58 = arith.addf %56, %57 : vector<4x256xf32>
    %59 = vector.shape_cast %58 : vector<4x256xf32> to vector<1x1x4x256xf32>
    %c0_24 = arith.constant 0 : index
    %c0_25 = arith.constant 0 : index
    %c0_26 = arith.constant 0 : index
    %c0_27 = arith.constant 0 : index
    %60 = vector.load %arg7[%c0_24, %c0_25, %c0_26, %c0_27] : memref<1x1x4x256xf32, #tpu.memory_space<vmem>>, vector<1x1x4x256xf32>
    tpu.vector_store %arg7[%c0_24, %c0_25, %c0_26, %c0_27], %59 {strides = array<i32>} : memref<1x1x4x256xf32, #tpu.memory_space<vmem>>, vector<1x1x4x256xf32>,
    %61 = vector.shape_cast %39 : vector<1x256xi32> to vector<1x1x1x256xi32>
    %c0_28 = arith.constant 0 : index
    %c0_29 = arith.constant 0 : index
    %c0_30 = arith.constant 0 : index
    %c0_31 = arith.constant 0 : index
    %62 = vector.load %arg8[%c0_28, %c0_29, %c0_30, %c0_31] : memref<1x1x1x256xi32, #tpu.memory_space<vmem>>, vector<1x1x1x256xi32>
    tpu.vector_store %arg8[%c0_28, %c0_29, %c0_30, %c0_31], %61 {strides = array<i32>} : memref<1x1x1x256xi32, #tpu.memory_space<vmem>>, vector<1x1x1x256xi32>,
    return
  }
  func.func @transform_0(%arg0: i32, %arg1: i32, %arg2: i32) -> (i32, i32, i32, i32) {
    %c0_i32 = arith.constant 0 : i32
    %c0_i32_0 = arith.constant 0 : i32
    return %arg1, %arg0, %c0_i32, %arg2 : i32, i32, i32, i32
  }
  func.func @transform_1(%arg0: i32, %arg1: i32, %arg2: i32) -> (i32, i32, i32) {
    %c0_i32 = arith.constant 0 : i32
    %c0_i32_0 = arith.constant 0 : i32
    %c0_i32_1 = arith.constant 0 : i32
    return %arg0, %c0_i32, %c0_i32_0 : i32, i32, i32
  }
  func.func @transform_2(%arg0: i32, %arg1: i32, %arg2: i32) -> (i32, i32, i32) {
    %c0_i32 = arith.constant 0 : i32
    %c0_i32_0 = arith.constant 0 : i32
    %c0_i32_1 = arith.constant 0 : i32
    return %arg0, %c0_i32, %c0_i32_0 : i32, i32, i32
  }
  func.func @transform_3(%arg0: i32, %arg1: i32, %arg2: i32) -> (i32, i32, i32) {
    %c0_i32 = arith.constant 0 : i32
    %c0_i32_0 = arith.constant 0 : i32
    %c0_i32_1 = arith.constant 0 : i32
    return %arg0, %c0_i32, %c0_i32_0 : i32, i32, i32
  }
  func.func @transform_4(%arg0: i32, %arg1: i32, %arg2: i32) -> (i32, i32, i32, i32) {
    %c0_i32 = arith.constant 0 : i32
    %c0_i32_0 = arith.constant 0 : i32
    return %arg1, %arg0, %c0_i32, %arg2 : i32, i32, i32, i32
  }
  func.func @transform_5(%arg0: i32, %arg1: i32, %arg2: i32) -> (i32, i32, i32, i32) {
    %c0_i32 = arith.constant 0 : i32
    %c0_i32_0 = arith.constant 0 : i32
    return %arg1, %arg0, %c0_i32, %arg2 : i32, i32, i32, i32
  }
}

</mosaic_0001>

<bundles_post_ra>
// kernel: tpu_custom_call.1
= control target key start
LH: loop header
LB: loop body
LE: loop exit
PB: predicated region body
PF: predicated region fallthrough
CT: control target
= control target key end

     0   :  { %s1347_s0 = inlined_call_operand.vmem [shape: f32[2,2,4,256], index: 0, kind: input, shape index: {}]   ;;  %s1348_s1 = inlined_call_operand.vmem [shape: f32[2,16,4], index: 1, kind: input, shape index: {}]   ;;  %s1349_s2 = inlined_call_operand.vmem [shape: f32[2,4,16], index: 2, kind: input, shape index: {}]   ;;  %s1350_s3 = inlined_call_operand.vmem [shape: f32[2,16,1], index: 3, kind: input, shape index: {}]   ;;  %s1351_s4 = inlined_call_operand.hbm [shape: f32[2,2,4,256], index: 4, kind: output, shape index: {0}]   ;;  %s1352_s5 = inlined_call_operand.hbm [shape: s32[2,2,1,256], index: 5, kind: output, shape index: {1}]  }
   0x1   :  { %1354 = sst [smem:[#allocation9_spill]] %s1347_s0 }
   0x2   :  { %11 = vsyncpa [#allocation3], 0 }
   0x3   :  { %13 = vsyncpa [#allocation3 + $0x1], 0 }
   0x4   :  { %14 = vsyncpa [#allocation5], 0 }
   0x5   :  { %16 = vsyncpa [#allocation5 + $0x1], 0  ;;  %s1166_s18 = smov 0   ;;  %s1168_s19 = smov 0  }
   0x6   :  { %s1170_s20 = smov 0   ;;  %s1172_s21 = smov 0  }
   0x7   :  { %s1174_s22 = smov 0   ;;  %s1176_s23 = smov 0  }
   0x8   :  { %s1178_s24 = smov 0   ;;  %s1180_s25 = smov 0  }
   0x9 LB: > { %s869_s26 = sadd.s32 4294967295, %s1132_s25   ;;  %s870_s27 = sadd.s32 4294967294, %s1132_s25   ;;  %s1132_s25 = sphi %s1180_s25, %s22_s25   ;;  %s1128_s24 = sphi %s1178_s24, %s1366_s24   ;;  %s1124_s23 = sphi %s1176_s23, %s1365_s23   ;;  %s1120_s22 = sphi %s1174_s22, %s1364_s22   ;;  %s1116_s21 = sphi %s1172_s21, %s1363_s21   ;;  %s1112_s20 = sphi %s1170_s20, %s1362_s20   ;;  %s1108_s19 = sphi %s1168_s19, %s1361_s19   ;;  %s1104_s18 = sphi %s1166_s18, %s1360_s18  }
   0xa   : > { %s37_s28 = sadd.s32 1, %s1124_s23  ;;  %s41_s29 = sadd.s32 1, %s1128_s24 }
   0xb   : > { %p39_p0 = scmp.ge.s32.totalorder %s37_s28, 2  ;;  %p170_p1 = scmp.ne.s32.totalorder %s1112_s20, %s1108_s19 }
   0xc   : > { %p171_p2 = scmp.eq.s32.totalorder %s869_s26, 3  ;;  %p176_p5 = scmp.ne.s32.totalorder %s1108_s19, %s1104_s18 }
   0xd   : > { %s1368_s28 = smov (%p39_p0, %s37_s28), 0  ;;  %s1370_s29 = smov (!%p39_p0, %s41_s29), %s1128_s24 }
   0xe   : > { %s153_s30 = ssub.s32 %s1124_s23, %s1368_s28  ;;  %p1217_p3 = por %p171_p2, %p170_p1 }
   0xf   : > { %p43_p4 = scmp.ge.s32.totalorder %s1370_s29, 2  ;;  %p177_p6 = scmp.eq.s32.totalorder %s870_s27, 3 }
  0x10   : > { %p873_p7 = scmp.ge.s32.totalorder %s1132_s25, 1  ;;  %p265_p9 = scmp.lt.s32.totalorder %s1132_s25, 5 }
  0x11   : > { %s1372_s29 = smov (%p43_p4, %s1370_s29), 0  ;;  %p1226_p8 = por %p177_p6, %p176_p5 }
  0x12   : > { %1356 = sst [smem:[#allocation8_spill]] %s1372_s29  ;;  %s154_s8 = ssub.s32 %s1128_s24, %s1372_s29 }
  0x13   : > { %s160_s9 = sadd.s32 1, %s1112_s20  ;;  %s155_s10 = sor.u32 %s154_s8, %s153_s30 }
  0x14   : > { %p266_p10 = pnand %p873_p7, %p265_p9  ;;  %p158_p11 = scmp.eq.s32.totalorder %s155_s10, 0 }
  0x15   : > { %p321_p12 = scmp.lt.s32.totalorder (!%p266_p10), %s1116_s21, 1  ;;  %p323_p13 = scmp.lt.s32.totalorder (!%p266_p10), %s1120_s22, 1 }
  0x16   : > { %s1235_s11 = scalar_select %p158_p11, %s1112_s20, %s160_s9  }
  0x17   : > { %269 = sbr.rel (%p266_p10) target bundleno = 406 (0x196), region = 36  ;;  %s1358_s0 = sld [smem:[#allocation9_spill]] (!%p266_p10) }
  0x18   : > { %s909_s9 = sshll.u32 (!%p266_p10), %s1116_s21, 2 }
  0x1c   : > { %s322_s12 = scalar_select %p321_p12, %s1116_s21, 1  ;;  %vm364_vm0 = vcmask 1043456   ;;  %vm396_vm1 = vcmask 1041408   ;;  %vm392_vm2 = vcmask 31744   ;;  %v1134_v23 = vmov 0  }
  0x1d   : > { %s1241_s13 = scalar_select %p323_p13, %s1120_s22, 1  ;;  %1005 = vset.pattern.permute.xlu0 %v1134_v23  ;;  %vm655_vm11 = vcmask 1040384  }
  0x1e   : > { %s877_s14 = sshll.u32 %s322_s12, 2  ;;  %s1026_s21 = scalar_lea.hbm %s1352_s5, 8 }
  0x1f   : > { %s876_s15 = sshll.u32 %s1241_s13, 1  ;;  %s915_s17 = sshll.u32 %s1241_s13, 4 }
  0x20   : > { %s330_s16 = sadd.s32 %s877_s14, %s876_s15  ;;  %s338_s29 = scalar_lea.vmem %s1348_s1, %s915_s17 }
  0x21   : > { %s878_s26 = sshll.u32 %s330_s16, 2  ;;  %v376_v1 = vld [vmem:[%s338_s29] sm:$0xff]  ;;  %v377_v2 = vld [vmem:[%s338_s29 + $0x8] sm:$0xff]  ;;  %s347_s29 = scalar_lea.vmem %s1350_s3, %s915_s17 }
  0x22   : > { %s332_s8 = scalar_lea.vmem %s1358_s0, %s878_s26  ;;  %v380_v3 = vpack.c.bf16 %v376_v1, %v376_v1  ;;  %v381_v4 = vpack.c.bf16 %v377_v2, %v377_v2  ;;  %v378_v22 = vld [vmem:[%s347_s29] sm:$0xff]  ;;  %v379_v24 = vld [vmem:[%s347_s29 + $0x8] sm:$0xff]  ;;  %s881_s15 = sshll.u32 %s1241_s13, 2 }
  0x23   : > { %v351_v0 = vld [vmem:[%s332_s8] sm:$0xff]  ;;  %511 = vperm.xlu0 %1005, %v378_v22   ;;  %s342_s26 = scalar_lea.vmem %s1349_s2, %s881_s15  ;;  %s1278_s13 = sand.u32 1, %s1108_s19  }
  0x24   : > { %353 = vst [vmem:[#allocation1] ss:$2 sm:$0xff] %v351_v0  ;;  %v389_v8 = vunpack.c.l.b16 %v380_v3  ;;  %v390_v9 = vunpack.c.l.b16 %v381_v4  ;;  %v382_v31 = vunpack.c.l.bf16 %v380_v3  ;;  %v383_v32 = vunpack.c.l.bf16 %v381_v4  ;;  %s875_s27 = sshll.u32 %s1278_s13, 1  ;;  %s908_s8 = sshll.u32 %s1120_s22, 1 }
  0x25   : > { %s319_s30 = scalar_lea.vmem [#allocation4], %s875_s27  ;;  %s681_s10 = sadd.s32 %s909_s9, %s908_s8 }
  0x26   : > { %v391_v20 = vpack.c.b16 %v390_v9, %v389_v8  ;;  %v384_v33 = vsub.f32 %v376_v1, %v382_v31  ;;  %v385_v34 = vsub.f32 %v377_v2, %v383_v32  ;;  %v537_v2 = vlaneseq  ;;  %s701_s29 = scalar_lea.hbm %s1352_s5, %s681_s10  ;;  %s703_s15 = sshll.u32 %s319_s30, 4  ;;  %s704_s15 = int_to_ptr.vmem [resolvable:$true] %s703_s15 }
  0x27   : > { %s705_s16 = sshll.u32 %s701_s29, 4  ;;  %s668_s17 = scalar_lea.sflag [#allocation5], %s1278_s13  ;;  %s706_s16 = int_to_ptr.hbm [resolvable:$true] %s705_s16 }
  0x28   : > { %v386_v35 = vpack.c.bf16 %v385_v34, %v384_v33  ;;  %v570_v33 = vld [vmem:[%s342_s26] sm:$0xf]  ;;  %vm659_vm14 = vcmp.lt.s32.totalorder %v537_v2, 256  ;;  %s1020_s26 = sshra.s32 %s706_s16, 4  ;;  %s1021_s26 = int_to_ptr.hbm [resolvable:$true] %s1020_s26 }
  0x29   : > { %s1022_s27 = scalar_lea.hbm %s1021_s26, 2  ;;  %p1027_p4 = scmp.lt.s32.totalorder %s1021_s26, %s1352_s5 }
  0x2a   : > { %p1023_p0 = scmp.ne.s32.totalorder %s1021_s26, %s1022_s27  ;;  %p1028_p5 = scmp.lt.s32.totalorder %s1026_s21, %s1022_s27 }
  0x2b   : > { %v354_v5 = vld.sshfl [vmem:[#allocation1] sm:$0xff pattern:$0x75316420]  ;;  %v355_v6 = vld.sshfl [vmem:[#allocation1 + $0x8] sm:$0xff pattern:$0x75316420]  ;;  %516 = vperm.xlu0 %1005, %v379_v24  }
  0x2c   : > { %v358_v7 = vpack.c.bf16 %v355_v6, %v354_v5  ;;  %p1024_p1 = pnand %p1023_p0, %p1217_p3  ;;  %p1029_p6 = por %p1028_p5, %p1027_p4 }
  0x2e   : > { %v359_v10 = vunpack.c.l.bf16 %v358_v7  ;;  %v360_v11 = vunpack.c.h.bf16 %v358_v7  ;;  %v432_v12 = vunpack.c.l.b16 %v358_v7  ;;  %v433_v13 = vunpack.c.h.b16 %v358_v7  ;;  %p1025_p2 = pneg %p1024_p1 }
  0x2f   : > { %v1266_v7 = vshrl.u32 %v537_v2, 7 }
  0x30   : > { %v363_v14 = vrot.slane %v360_v11, 4  ;;  %v434_v15 = vpack.c.b16 %v432_v12, %v432_v12  ;;  %v435_v16 = vpack.c.b16 %v433_v13, %v433_v13  ;;  %p1030_p7 = pnand %p1029_p6, %p1025_p2 }
  0x31   : > { %v1269_v12 = vadd.s32 8, %v1266_v7 }
  0x32   : > { %v365_v17 = vsel %vm364_vm0, %v359_v10, %v363_v14  ;;  %v437_v18 = vsel %vm396_vm1, %v434_v15, 0  ;;  %v440_v19 = vsel %vm396_vm1, %v435_v16, 0 }
  0x33   : > { %v367_v21 = vsub.f32 %v351_v0, %v365_v17  ;;  %449 = vmatpush.bf16.msra.mxu2 %v437_v18  ;;  %463 = vmatpush.bf16.msra.mxu3 %v440_v19  ;;  %v540_v17 = vcvt.s32.f32 %v1266_v7 }
  0x35   : > { %369 = vst [vmem:[#allocation1] ss:$2 sm:$0xff] %v367_v21 }
  0x36   : > { %886 = vmatmul.msk.bf16.vlgmr.msra.gmra.mxu2 %vm392_vm2, %v391_v20  ;;  %887 = vmatmul.msk.bf16.vlgmr.msra.gmra.mxu3 %vm392_vm2, %v391_v20 }
  0x3c   : > { %v370_v25 = vld.sshfl [vmem:[#allocation1] sm:$0xff pattern:$0x75316420]  ;;  %v371_v26 = vld.sshfl [vmem:[#allocation1 + $0x8] sm:$0xff pattern:$0x75316420] }
  0x3d   : > { %v374_v27 = vpack.c.bf16 %v370_v25, %v370_v25  ;;  %v375_v28 = vpack.c.bf16 %v371_v26, %v371_v26 }
  0x3f   : > { %v398_v29 = vsel %vm396_vm1, %v374_v27, 0  ;;  %v401_v30 = vsel %vm396_vm1, %v375_v28, 0 }
  0x40   : > { %410 = vmatpush.bf16.msra.mxu0 %v398_v29  ;;  %424 = vmatpush.bf16.msra.mxu1 %v401_v30 }
  0x43   : > { %884 = vmatmul.msk.bf16.vlgmr.msra.gmra.mxu0 %vm392_vm2, %v391_v20  ;;  %885 = vmatmul.msk.bf16.vlgmr.msra.gmra.mxu1 %vm392_vm2, %v391_v20 }
  0x44   : > { %480 = vmatpush.bf16.msrb.mxu0 %v437_v18  ;;  %494 = vmatpush.bf16.msrb.mxu1 %v440_v19  ;;  %v541_v18 = vcvt.s32.f32 %v1269_v12 }
  0x53   : > { %888 = vmatmul.msk.bf16.vlgmr.msrb.gmra.mxu0 %vm392_vm2, %v386_v35  ;;  %889 = vmatmul.msk.bf16.vlgmr.msrb.gmra.mxu1 %vm392_vm2, %v386_v35 }
  0x95   : > { %v512_v44 = vpop.permute.xlu0 %511 }
  0x9d   : > { %v517_v61 = vpop.permute.xlu0 %516 }
  0xb9   : > { %v451_v40 = vpop.f32.mrf.mxu2  ;;  %v465_v41 = vpop.f32.mrf.mxu3 }
  0xc0   : > { %v412_v36 = vpop.f32.mrf.mxu0  ;;  %v426_v37 = vpop.f32.mrf.mxu1 }
  0xc1   : > { %v452_v45 = vadd.f32 %v451_v40, %v412_v36  ;;  %v466_v46 = vadd.f32 %v465_v41, %v426_v37  ;;  %v453_v47 = vpop.f32.mrf.mxu2  ;;  %v467_v48 = vpop.f32.mrf.mxu3  ;;  %v585_v36 = vpack.c.bf16 %v570_v33, %v570_v33 }
  0xc3   : > { %v586_v41 = vunpack.c.l.bf16 %v585_v36 }
  0xc8   : > { %v414_v38 = vpop.f32.mrf.mxu0  ;;  %v428_v39 = vpop.f32.mrf.mxu1 }
  0xc9   : > { %v454_v51 = vadd.f32 %v453_v47, %v414_v38  ;;  %v468_v52 = vadd.f32 %v467_v48, %v428_v39 }
  0xd0   : > { %v482_v42 = vpop.f32.mrf.mxu0  ;;  %v496_v43 = vpop.f32.mrf.mxu1 }
  0xd1   : > { %v501_v49 = vadd.f32 %v482_v42, %v452_v45  ;;  %v502_v50 = vadd.f32 %v496_v43, %v466_v46 }
  0xd3   : > { %v505_v55 = vmul.f32 2.0, %v501_v49  ;;  %v506_v56 = vmul.f32 2.0, %v502_v50  ;;  %v587_v49 = vsub.f32 %v570_v33, %v586_v41 }
  0xd5   : > { %v519_v62 = vsub.f32 %v512_v44, %v505_v55  ;;  %v520_v63 = vsub.f32 %v512_v44, %v506_v56  ;;  %v1135_v55 = vmov 1.0|1.0  }
  0xd8   : > { %v484_v53 = vpop.f32.mrf.mxu0  ;;  %v498_v54 = vpop.f32.mrf.mxu1 }
  0xd9   : > { %v503_v57 = vadd.f32 %v484_v53, %v454_v51  ;;  %v504_v58 = vadd.f32 %v498_v54, %v468_v52  ;;  %v588_v54 = vpack.c.bf16 %v587_v49, %v587_v49 }
  0xdb   : > { %v507_v59 = vmul.f32 2.0, %v503_v57  ;;  %v508_v60 = vmul.f32 2.0, %v504_v58 }
  0xdd   : > { %v521_v0 = vsub.f32 %v517_v61, %v507_v59  ;;  %v522_v1 = vsub.f32 %v517_v61, %v508_v60 }
  0xdf   : > { %v523_v3 = vmin.f32 %v519_v62, %v521_v0  ;;  %v530_v4 = vmin.f32 %v520_v63, %v522_v1 }
  0xe1   : > { %v524_v5 = vrot.slane %v523_v3, 4  ;;  %v531_v6 = vrot.slane %v530_v4, 4 }
  0xe3   : > { %v525_v8 = vmin.f32 %v523_v3, %v524_v5  ;;  %v532_v9 = vmin.f32 %v530_v4, %v531_v6 }
  0xe5   : > { %v526_v10 = vrot.slane %v525_v8, 2  ;;  %v533_v11 = vrot.slane %v532_v9, 2 }
  0xe7   : > { %v527_v13 = vmin.f32 %v525_v8, %v526_v10  ;;  %v534_v14 = vmin.f32 %v532_v9, %v533_v11 }
  0xe9   : > { %v528_v15 = vrot.slane %v527_v13, 1  ;;  %v535_v16 = vrot.slane %v534_v14, 1 }
  0xeb   : > { %v529_v19 = vmin.f32 %v527_v13, %v528_v15  ;;  %v536_v20 = vmin.f32 %v534_v14, %v535_v16 }
  0xed   : > { %vm542_vm3 = vcmp.eq.f32.partialorder %v519_v62, %v529_v19  ;;  %vm544_vm4 = vcmp.eq.f32.partialorder %v521_v0, %v529_v19  ;;  %vm543_vm5 = vcmp.eq.f32.partialorder %v520_v63, %v536_v20  ;;  %vm545_vm6 = vcmp.eq.f32.partialorder %v522_v1, %v536_v20 }
  0xee   : > { %v546_v21 = vsel %vm542_vm3, %v540_v17, 16.0  ;;  %v548_v22 = vsel %vm544_vm4, %v541_v18, 16.0  ;;  %v547_v23 = vsel %vm543_vm5, %v540_v17, 16.0  ;;  %v549_v24 = vsel %vm545_vm6, %v541_v18, 16.0 }
  0xef   : > { %v550_v25 = vmin.f32 %v546_v21, %v548_v22  ;;  %v557_v26 = vmin.f32 %v547_v23, %v549_v24  ;;  %vm566_vm9 = vcmp.lt.f32.partialorder %v529_v19, inf  ;;  %vm567_vm10 = vcmp.lt.f32.partialorder %v536_v20, inf }
  0xf0   : > { %vm589_vm4 = vcmask 130048  }
  0xf1   : > { %v551_v27 = vrot.slane %v550_v25, 4  ;;  %v558_v28 = vrot.slane %v557_v26, 4 }
  0xf3   : > { %v552_v29 = vmin.f32 %v550_v25, %v551_v27  ;;  %v559_v30 = vmin.f32 %v557_v26, %v558_v28 }
  0xf5   : > { %v553_v31 = vrot.slane %v552_v29, 2  ;;  %v560_v32 = vrot.slane %v559_v30, 2 }
  0xf7   : > { %v554_v34 = vmin.f32 %v552_v29, %v553_v31  ;;  %v561_v35 = vmin.f32 %v559_v30, %v560_v32 }
  0xf9   : > { %v555_v37 = vrot.slane %v554_v34, 1  ;;  %v562_v38 = vrot.slane %v561_v35, 1 }
  0xfb   : > { %v556_v39 = vmin.f32 %v554_v34, %v555_v37  ;;  %v563_v40 = vmin.f32 %v561_v35, %v562_v38 }
  0xfd   : > { %vm917_vm7 = vcmp.lt.s32.totalorder %v556_v39, 0  ;;  %v918_v42 = vceil.f32 %v556_v39  ;;  %v919_v43 = vfloor.f32 %v556_v39  ;;  %vm922_vm8 = vcmp.lt.s32.totalorder %v563_v40, 0 }
  0xfe   : > { %v923_v44 = vceil.f32 %v563_v40  ;;  %v924_v45 = vfloor.f32 %v563_v40 }
  0xff   : > { %v920_v46 = vsel %vm917_vm7, %v918_v42, %v919_v43 }
 0x100   : > { %v921_v47 = vcvt.f32.s32 %v920_v46  ;;  %v925_v48 = vsel %vm922_vm8, %v923_v44, %v924_v45 }
 0x101   : > { %v926_v50 = vcvt.f32.s32 %v925_v48 }
 0x102   : > { %v568_v51 = vsel %vm566_vm9, %v921_v47, 0 }
 0x103   : > { %vm571_vm12 = vcmp.eq.s32.totalorder %v1266_v7, %v568_v51  ;;  %vm573_vm13 = vcmp.eq.s32.totalorder %v1269_v12, %v568_v51  ;;  %v569_v52 = vsel %vm567_vm10, %v926_v50, 0 }
 0x104   : > { %vm894_vm15 = vmpackc.low %vm573_vm13, %vm571_vm12  ;;  %vm572_vm1 = vcmp.eq.s32.totalorder %v1266_v7, %v569_v52  ;;  %vm574_vm2 = vcmp.eq.s32.totalorder %v1269_v12, %v569_v52  ;;  %v654_v53 = vrot.slane %v569_v52, 7 }
 0x105   : > { %895 = vmatpush.bf16.msk.msrb.mxu2 %vm894_vm15, %v1135_v55  ;;  %vm897_vm3 = vmpackc.low %vm574_vm2, %vm572_vm1  ;;  %901 = vmatpush.bf16.msk.msra.mxu0 %vm894_vm15, %v1135_v55 }
 0x106   : > { %898 = vmatpush.bf16.msk.msrb.mxu3 %vm897_vm3, %v1135_v55  ;;  %904 = vmatpush.bf16.msk.msra.mxu1 %vm897_vm3, %v1135_v55  ;;  %v656_v56 = vsel %vm655_vm11, %v568_v51, %v654_v53 }
 0x107   : > { %661 = vst.msk [vmem:[%s319_s30] sm:$0x3] %vm659_vm14, %v656_v56 }
 0x108   : > { %896 = vmatmul.msk.bf16.vlgmr.msrb.gmra.mxu2 %vm589_vm4, %v588_v54  ;;  %902 = vmatmul.msk.bf16.vlgmr.msra.gmra.mxu0 %vm589_vm4, %v585_v36 }
 0x109   : > { %899 = vmatmul.msk.bf16.vlgmr.msrb.gmra.mxu3 %vm589_vm4, %v588_v54  ;;  %905 = vmatmul.msk.bf16.vlgmr.msra.gmra.mxu1 %vm589_vm4, %v585_v36 }
 0x10a   : > { %1033 = shalt.err (!%p1030_p7)
}
 0x10b   : > { %928 = dma.vmem_to_hbm [thread:$0]  (%p1217_p3), %s704_s15, 32, %s706_s16, %s668_s17  }
 0x10c   : > { %s874_s30 = sshll.u32 %s1278_s13, 3  ;;  %s910_s12 = sshll.u32 %s681_s10, 2 }
 0x10d   : > { %s683_s0 = scalar_lea.hbm %s1351_s4, %s910_s12  ;;  %s312_s26 = scalar_lea.vmem [#allocation2], %s874_s30 }
 0x10e   : > { %s685_s27 = sshll.u32 %s312_s26, 4  ;;  %s687_s22 = sshll.u32 %s683_s0, 4  ;;  %s686_s27 = int_to_ptr.vmem [resolvable:$true] %s685_s27  ;;  %s688_s22 = int_to_ptr.hbm [resolvable:$true] %s687_s22 }
 0x10f   : > { %s663_s10 = scalar_lea.sflag [#allocation3], %s1278_s13  ;;  %s1048_s15 = sshra.s32 %s688_s22, 4  ;;  %s1049_s15 = int_to_ptr.hbm [resolvable:$true] %s1048_s15 }
 0x110   : > { %s1050_s16 = scalar_lea.hbm %s1049_s15, 8  ;;  %s1054_s8 = scalar_lea.hbm %s1351_s4, 32 }
 0x111   : > { %p1051_p9 = scmp.ne.s32.totalorder %s1049_s15, %s1050_s16  ;;  %p1055_p12 = scmp.lt.s32.totalorder %s1049_s15, %s1351_s4 }
 0x112   : > { %p1056_p13 = scmp.lt.s32.totalorder %s1054_s8, %s1050_s16 }
 0x113   : > { %p1052_p10 = pnand %p1051_p9, %p1217_p3 }
 0x114   : > { %p1057_p0 = por %p1056_p13, %p1055_p12 }
 0x115   : > { %p1053_p11 = pneg %p1052_p10 }
 0x117   : > { %p1058_p1 = pnand %p1057_p0, %p1053_p11 }
 0x185   : > { %v631_v57 = vpop.f32.mrf.mxu0 }
 0x186   : > { %v644_v58 = vpop.f32.mrf.mxu1 }
 0x18b   : > { %v602_v59 = vpop.f32.mrf.mxu2 }
 0x18c   : > { %v615_v60 = vpop.f32.mrf.mxu3  ;;  %v632_v0 = vadd.f32 %v631_v57, %v602_v59 }
 0x18d   : > { %v645_v61 = vadd.f32 %v644_v58, %v615_v60  ;;  %v633_v62 = vpop.f32.mrf.mxu0 }
 0x18e   : > { %v646_v63 = vpop.f32.mrf.mxu1 }
 0x18f   : > { %v650_v1 = vrot.slane %v645_v61, 4 }
 0x191   : > { %v651_v2 = vsel %vm364_vm0, %v632_v0, %v650_v1 }
 0x192   : > { %653 = vst [vmem:[%s312_s26] sm:$0xff] %v651_v2 }
 0x193   : > { %v604_v3 = vpop.f32.mrf.mxu2 }
 0x194   : > { %1061 = shalt.err (!%p1058_p1)
}
 0x195   : > { %927 = dma.vmem_to_hbm [thread:$0]  (%p1217_p3), %s686_s27, 128, %s688_s22, %s663_s10   ;;  %v617_v4 = vpop.f32.mrf.mxu3 }
 0x196 PF: > { %p938_p2 = scmp.ge.s32.totalorder %s1132_s25, 2  ;;  %s717_s13 = sand.u32 1, %s1104_s18  }
 0x197   : > { %s718_s12 = scalar_lea.sflag [#allocation3], %s717_s13 }
 0x198   : > { %p932_p4 = pnand %p938_p2, %p1226_p8 }
 0x19a   : > { %p933_p5 = pneg %p932_p4 }
 0x19c   : > { %1095 = dma.done.wait (%p933_p5), %s718_s12, 128  }
 0x19d   : > { %1097 = vsyncadd (%p933_p5), %s718_s12, 4294967168  ;;  %s728_s14 = scalar_lea.sflag [#allocation5], %s717_s13 }
 0x19e   : > { %1099 = dma.done.wait (%p933_p5), %s728_s14, 32  }
 0x19f   : > { %1101 = vsyncadd (%p933_p5), %s728_s14, 4294967264  ;;  %s22_s25 = sadd.s32 1, %s1132_s25   ;;  %s1359_s6 = sld [smem:[#allocation8_spill]] }
 0x1a0   : > { %p19_p6 = scmp.ge.s32.totalorder %s22_s25, 6   ;;  %s1360_s18 = smov %s1108_s19 }
 0x1a1   : > { %s1361_s19 = smov %s1112_s20  ;;  %s1362_s20 = smov %s1235_s11 }
 0x1a2   : > { %s1363_s21 = smov %s1124_s23  ;;  %s1364_s22 = smov %s1128_s24 }
 0x1a3   : > { %s1365_s23 = smov %s1368_s28  ;;  %21 = sbr.rel (!%p19_p6) target bundleno = 9 (0x9), region = 97 }
 0x1a5   : > { %s1366_s24 = smov %s1359_s6 }
 0x1a8   :  { %734 = vsyncpa [#allocation3], 1 }
 0x1a9   :  { %736 = vsyncpa [#allocation3 + $0x1], 1 }
 0x1aa   :  { %737 = vsyncpa [#allocation5], 1 }
 0x1ab   :  { %739 = vsyncpa [#allocation5 + $0x1], 1 }

</bundles_post_ra>
